<compile_context>
chip_gen: v6e
topology: v6e:2x2x1
jax: 0.10.0
libtpu: 0.0.40
codegen_flags: <defaults>
</compile_context>

<pallas_src>
import jax
import jax.numpy as jnp
from jax.experimental import pallas as pl
from jax.experimental.pallas import tpu as pltpu

K = 5      # conv kernel size
PAD = 2    # conv padding


def _enc_layer_kernel(x_ref, w_ref, b_ref, re_ref, ro_ref, se_ref, so_ref,
                      enc_ref, pool_ref, xpad_ref):
    """Fused Conv2d(5x5, pad=2) + ReLU + MaxPool2d(2,2) for one image.

    x_ref   : (1, H, W*Cin)            bf16  un-padded input rows (one image)
    w_ref   : (K, (W+4)*Cin, W*Cout)   bf16  banded conv weights
    b_ref   : (1, W*Cout)              f32   bias tiled across W
    re_ref  : (H/2, H)                 f32   0/1 row selector (even rows)
    ro_ref  : (H/2, H)                 f32   0/1 row selector (odd rows)
    se_ref  : (W*Cout, W/2*Cout)       f32   0/1 lane selector (even columns)
    so_ref  : (W*Cout, W/2*Cout)       f32   0/1 lane selector (odd columns)
    enc_ref : (1, H, W*Cout)           f32   conv + ReLU output (lane dense)
    pool_ref: (1, H/2, (W/2)*Cout)     f32   pooled output
    xpad_ref: (H+4, (W+4)*Cin)         f32   scratch: zero-padded image
    """
    _, H, WCin = x_ref.shape
    WC = enc_ref.shape[2]
    pad_cols = (xpad_ref.shape[1] - WCin) // 2      # == PAD * Cin

    # Build the zero-padded image in VMEM (halo handled in-kernel, no padded HBM
    # copy).  Re-zero every grid step so the halo stays correct even when the
    # batch axis is sharded across TensorCores.
    xpad_ref[...] = jnp.zeros_like(xpad_ref)
    xpad_ref[PAD:PAD + H, pad_cols:pad_cols + WCin] = x_ref[0].astype(xpad_ref.dtype)

    # Conv2d: one MXU matmul per kernel row.  Contraction dim = (W+4)*Cin,
    # output dim = lane-dense flattened (W, Cout); bf16 operands, f32 accumulate.
    acc = jnp.zeros((H, WC), dtype=jnp.float32)
    for kh in range(w_ref.shape[0]):
        lhs = xpad_ref[kh:kh + H, :].astype(w_ref.dtype)
        acc = acc + jnp.dot(lhs, w_ref[kh], preferred_element_type=jnp.float32)

    enc = jnp.maximum(acc + b_ref[...], 0.0)         # bias + ReLU in f32
    enc_ref[0] = enc.astype(enc_ref.dtype)           # unmasked, lane-dense stores

    # MaxPool2d(2,2) in registers: the 2x2 window max is
    #   max over (dh, dw) of enc[2*h2 + dh, (2*w2 + dw)*Cout + co].
    # Row / lane picking is done with exact one-hot selection matmuls so no
    # sublane/lane relayouts or strided memory re-loads are needed.
    hmax = jnp.maximum(
        jnp.dot(re_ref[...], enc, preferred_element_type=jnp.float32),
        jnp.dot(ro_ref[...], enc, preferred_element_type=jnp.float32))
    pool = jnp.maximum(
        jnp.dot(hmax, se_ref[...], preferred_element_type=jnp.float32),
        jnp.dot(hmax, so_ref[...], preferred_element_type=jnp.float32))
    pool_ref[0] = pool.astype(pool_ref.dtype)


@jax.jit
def enc_layer_forward(x_nchw, w_oihw, bias):
    """EncLayer.forward -- NCHW in / NCHW out, exactly like the PyTorch module."""
    B, Cin, H, W = x_nchw.shape
    Cout = w_oihw.shape[0]
    assert H % 2 == 0 and W % 2 == 0
    H2, W2 = H // 2, W // 2
    PWC = (W + 2 * PAD) * Cin          # padded width * Cin   (matmul K dim)
    WC = W * Cout                      # lane-dense conv output width
    W2C = W2 * Cout

    # NCHW -> NHWC, then flatten (W, Cin) into the lane axis (free view).
    # TODO(synk): fold this NCHW->NHWC transpose into the kernel as well (it is
    # the only remaining wrapper-side HBM pass over the input).
    x_flat = jnp.transpose(x_nchw, (0, 2, 3, 1)).reshape(B, H, W * Cin)
    x_flat = x_flat.astype(jnp.bfloat16)

    # Banded conv weight: w_big[kh, (w+kw)*Cin + ci, w*Cout + co] = w[co, ci, kh, kw].
    w_hwio = jnp.transpose(w_oihw, (2, 3, 1, 0)).astype(jnp.float32)   # (K, K, Cin, Cout)
    base = w_hwio.reshape(K, K * Cin, Cout)
    cols = [jnp.pad(base, ((0, 0), (w * Cin, (W - 1 - w) * Cin), (0, 0)))
            for w in range(W)]
    w_big = jnp.concatenate(cols, axis=2).astype(jnp.bfloat16)          # (K, PWC, WC)

    b_big = jnp.tile(bias.astype(jnp.float32), (W,)).reshape(1, WC)

    # Exact one-hot selectors for the 2x2 max-pool.
    h_idx = jnp.arange(H)[None, :]
    h2_idx = jnp.arange(H2)[:, None]
    r_even = (h_idx == 2 * h2_idx).astype(jnp.float32)                  # (H2, H)
    r_odd = (h_idx == 2 * h2_idx + 1).astype(jnp.float32)

    j = jnp.arange(WC)[:, None]        # source lane:  w * Cout + co
    kcol = jnp.arange(W2C)[None, :]    # dest lane:    w2 * Cout + co
    same_c = (j % Cout) == (kcol % Cout)
    s_even = (same_c & ((j // Cout) == 2 * (kcol // Cout))).astype(jnp.float32)
    s_odd = (same_c & ((j // Cout) == 2 * (kcol // Cout) + 1)).astype(jnp.float32)

    enc_flat, pool_flat = pl.pallas_call(
        _enc_layer_kernel,
        out_shape=(
            jax.ShapeDtypeStruct((B, H, WC), jnp.float32),
            jax.ShapeDtypeStruct((B, H2, W2C), jnp.float32),
        ),
        grid_spec=pltpu.PrefetchScalarGridSpec(
            num_scalar_prefetch=0,
            grid=(B,),
            in_specs=[
                pl.BlockSpec((1, H, W * Cin), lambda b: (b, 0, 0)),   # x (per image)
                pl.BlockSpec((K, PWC, WC), lambda b: (0, 0, 0)),      # banded weights
                pl.BlockSpec((1, WC), lambda b: (0, 0)),              # tiled bias
                pl.BlockSpec((H2, H), lambda b: (0, 0)),              # row selectors
                pl.BlockSpec((H2, H), lambda b: (0, 0)),
                pl.BlockSpec((WC, W2C), lambda b: (0, 0)),            # lane selectors
                pl.BlockSpec((WC, W2C), lambda b: (0, 0)),
            ],
            out_specs=(
                pl.BlockSpec((1, H, WC), lambda b: (b, 0, 0)),
                pl.BlockSpec((1, H2, W2C), lambda b: (b, 0, 0)),
            ),
            scratch_shapes=[pltpu.VMEM((H + 2 * PAD, PWC), jnp.float32)],
        ),
        compiler_params=pltpu.CompilerParams(
            dimension_semantics=("parallel",)),
    )(x_flat, w_big, b_big, r_even, r_odd, s_even, s_odd)

    # Undo the lane flattening and return NCHW like the PyTorch module.
    enc = enc_flat.reshape(B, H, W, Cout).transpose(0, 3, 1, 2)
    pool = pool_flat.reshape(B, H2, W2, Cout).transpose(0, 3, 1, 2)
    return enc, pool


def _reference_forward(x_nchw, w_oihw, bias):
    """Plain-JAX reference mirroring the PyTorch semantics.

    The kernel feeds x / conv weights to the MXU in bf16 (f32 accumulation), so
    the reference applies the same operand quantization for a fair comparison.
    """
    xq = x_nchw.astype(jnp.bfloat16).astype(jnp.float32)
    wq = w_oihw.astype(jnp.bfloat16).astype(jnp.float32)
    conv = jax.lax.conv_general_dilated(
        xq, wq, window_strides=(1, 1),
        padding=((PAD, PAD), (PAD, PAD)),
        dimension_numbers=("NCHW", "OIHW", "NCHW"),
        precision=jax.lax.Precision.HIGHEST)
    enc = jnp.maximum(conv + bias[None, :, None, None], 0.0)
    pool = jax.lax.reduce_window(
        enc, -jnp.inf, jax.lax.max,
        window_dimensions=(1, 1, 2, 2), window_strides=(1, 1, 2, 2),
        padding="VALID")
    return enc, pool


if __name__ == "__main__":
    key = jax.random.PRNGKey(0)
    k_x, k_w, k_b = jax.random.split(key, 3)

    B, Cin, Cout, H, W = 2, 4, 8, 16, 16
    x = jax.random.normal(k_x, (B, Cin, H, W), dtype=jnp.float32)
    w = jax.random.normal(k_w, (Cout, Cin, K, K), dtype=jnp.float32) * 0.1
    b = jax.random.normal(k_b, (Cout,), dtype=jnp.float32) * 0.1

    enc, pool = jax.block_until_ready(enc_layer_forward(x, w, b))

    enc_ref, pool_ref = _reference_forward(x, w, b)
    assert enc.shape == (B, Cout, H, W)
    assert pool.shape == (B, Cout, H // 2, W // 2)
    assert jnp.allclose(enc, enc_ref, atol=1e-4, rtol=1e-4)
    # Pool passes through two extra f32 selection matmuls on the MXU; keep a
    # small extra margin for the MXU's f32 multi-pass rounding.
    assert jnp.allclose(pool, pool_ref, atol=5e-3, rtol=5e-3)

    print("KERNEL_OK")
</pallas_src>

<mosaic_0001>
module attributes {stable_mosaic.version = 11 : i64} {
  func.func @_enc_layer_kernel(%arg0: i32, %arg1: memref<1x16x64xbf16, #tpu.memory_space<vmem>>, %arg2: memref<5x80x128xbf16, #tpu.memory_space<vmem>>, %arg3: memref<1x128xf32, #tpu.memory_space<vmem>>, %arg4: memref<8x16xf32, #tpu.memory_space<vmem>>, %arg5: memref<8x16xf32, #tpu.memory_space<vmem>>, %arg6: memref<128x64xf32, #tpu.memory_space<vmem>>, %arg7: memref<128x64xf32, #tpu.memory_space<vmem>>, %arg8: memref<1x16x128xf32, #tpu.memory_space<vmem>>, %arg9: memref<1x8x64xf32, #tpu.memory_space<vmem>>, %arg10: memref<20x80xf32, #tpu.memory_space<vmem>>) attributes {dimension_semantics = [#tpu.dimension_semantics<parallel>], iteration_bounds = array<i64: 2>, scalar_prefetch = 0 : i64, scratch_operands = 1 : i64, tpu.core_type = #tpu.core_type<tc>, window_params = [{transform_indices = @transform_0, window_bounds = array<i64: 1, 16, 64>}, {pipeline_mode = #tpu.pipeline_mode<synchronous>, transform_indices = @transform_1, window_bounds = array<i64: 5, 80, 128>}, {pipeline_mode = #tpu.pipeline_mode<synchronous>, transform_indices = @transform_2, window_bounds = array<i64: 1, 128>}, {pipeline_mode = #tpu.pipeline_mode<synchronous>, transform_indices = @transform_3, window_bounds = array<i64: 8, 16>}, {pipeline_mode = #tpu.pipeline_mode<synchronous>, transform_indices = @transform_4, window_bounds = array<i64: 8, 16>}, {pipeline_mode = #tpu.pipeline_mode<synchronous>, transform_indices = @transform_5, window_bounds = array<i64: 128, 64>}, {pipeline_mode = #tpu.pipeline_mode<synchronous>, transform_indices = @transform_6, window_bounds = array<i64: 128, 64>}, {transform_indices = @transform_7, window_bounds = array<i64: 1, 16, 128>}, {transform_indices = @transform_8, window_bounds = array<i64: 1, 8, 64>}]} {
    %cst = arith.constant 0.000000e+00 : f32
    %0 = vector.broadcast %cst : f32 to vector<20x80xf32>
    %c0 = arith.constant 0 : index
    %c0_0 = arith.constant 0 : index
    %1 = vector.load %arg10[%c0, %c0_0] : memref<20x80xf32, #tpu.memory_space<vmem>>, vector<20x80xf32>
    tpu.vector_store %arg10[%c0, %c0_0], %0 {strides = array<i32>} : memref<20x80xf32, #tpu.memory_space<vmem>>, vector<20x80xf32>,
    %c0_1 = arith.constant 0 : index
    %c0_2 = arith.constant 0 : index
    %c0_3 = arith.constant 0 : index
    %2 = vector.load %arg1[%c0_1, %c0_2, %c0_3] : memref<1x16x64xbf16, #tpu.memory_space<vmem>>, vector<1x16x64xbf16>
    %3 = vector.shape_cast %2 : vector<1x16x64xbf16> to vector<16x64xbf16>
    %4 = arith.extf %3 : vector<16x64xbf16> to vector<16x64xf32>
    %c2 = arith.constant 2 : index
    %c8 = arith.constant 8 : index
    %5 = vector.load %arg10[%c2, %c8] : memref<20x80xf32, #tpu.memory_space<vmem>>, vector<16x64xf32>
    tpu.vector_store %arg10[%c2, %c8], %4 {strides = array<i32>} : memref<20x80xf32, #tpu.memory_space<vmem>>, vector<16x64xf32>,
    %cst_4 = arith.constant 0.000000e+00 : f32
    %6 = vector.broadcast %cst_4 : f32 to vector<16x128xf32>
    %c0_5 = arith.constant 0 : index
    %c0_6 = arith.constant 0 : index
    %7 = vector.load %arg10[%c0_5, %c0_6] : memref<20x80xf32, #tpu.memory_space<vmem>>, vector<16x80xf32>
    %8 = arith.truncf %7 : vector<16x80xf32> to vector<16x80xbf16>
    %c0_7 = arith.constant 0 : index
    %c0_8 = arith.constant 0 : index
    %c0_9 = arith.constant 0 : index
    %9 = vector.load %arg2[%c0_7, %c0_8, %c0_9] : memref<5x80x128xbf16, #tpu.memory_space<vmem>>, vector<1x80x128xbf16>
    %10 = vector.shape_cast %9 : vector<1x80x128xbf16> to vector<80x128xbf16>
    %cst_10 = arith.constant dense<0.000000e+00> : vector<16x128xf32>
    %11 = tpu.matmul %8, %10, %cst_10 {dimension_numbers = #tpu.dot_dimension_numbers<[1], [0], [0], [1], [0, 0, 1, 1], [], []>} : vector<16x80xbf16>, vector<80x128xbf16>, vector<16x128xf32> -> vector<16x128xf32>
    %12 = arith.addf %6, %11 : vector<16x128xf32>
    %c1 = arith.constant 1 : index
    %c0_11 = arith.constant 0 : index
    %13 = vector.load %arg10[%c1, %c0_11] : memref<20x80xf32, #tpu.memory_space<vmem>>, vector<16x80xf32>
    %14 = arith.truncf %13 : vector<16x80xf32> to vector<16x80xbf16>
    %c1_12 = arith.constant 1 : index
    %c0_13 = arith.constant 0 : index
    %c0_14 = arith.constant 0 : index
    %15 = vector.load %arg2[%c1_12, %c0_13, %c0_14] : memref<5x80x128xbf16, #tpu.memory_space<vmem>>, vector<1x80x128xbf16>
    %16 = vector.shape_cast %15 : vector<1x80x128xbf16> to vector<80x128xbf16>
    %cst_15 = arith.constant dense<0.000000e+00> : vector<16x128xf32>
    %17 = tpu.matmul %14, %16, %cst_15 {dimension_numbers = #tpu.dot_dimension_numbers<[1], [0], [0], [1], [0, 0, 1, 1], [], []>} : vector<16x80xbf16>, vector<80x128xbf16>, vector<16x128xf32> -> vector<16x128xf32>
    %18 = arith.addf %12, %17 : vector<16x128xf32>
    %c2_16 = arith.constant 2 : index
    %c0_17 = arith.constant 0 : index
    %19 = vector.load %arg10[%c2_16, %c0_17] : memref<20x80xf32, #tpu.memory_space<vmem>>, vector<16x80xf32>
    %20 = arith.truncf %19 : vector<16x80xf32> to vector<16x80xbf16>
    %c2_18 = arith.constant 2 : index
    %c0_19 = arith.constant 0 : index
    %c0_20 = arith.constant 0 : index
    %21 = vector.load %arg2[%c2_18, %c0_19, %c0_20] : memref<5x80x128xbf16, #tpu.memory_space<vmem>>, vector<1x80x128xbf16>
    %22 = vector.shape_cast %21 : vector<1x80x128xbf16> to vector<80x128xbf16>
    %cst_21 = arith.constant dense<0.000000e+00> : vector<16x128xf32>
    %23 = tpu.matmul %20, %22, %cst_21 {dimension_numbers = #tpu.dot_dimension_numbers<[1], [0], [0], [1], [0, 0, 1, 1], [], []>} : vector<16x80xbf16>, vector<80x128xbf16>, vector<16x128xf32> -> vector<16x128xf32>
    %24 = arith.addf %18, %23 : vector<16x128xf32>
    %c3 = arith.constant 3 : index
    %c0_22 = arith.constant 0 : index
    %25 = vector.load %arg10[%c3, %c0_22] : memref<20x80xf32, #tpu.memory_space<vmem>>, vector<16x80xf32>
    %26 = arith.truncf %25 : vector<16x80xf32> to vector<16x80xbf16>
    %c3_23 = arith.constant 3 : index
    %c0_24 = arith.constant 0 : index
    %c0_25 = arith.constant 0 : index
    %27 = vector.load %arg2[%c3_23, %c0_24, %c0_25] : memref<5x80x128xbf16, #tpu.memory_space<vmem>>, vector<1x80x128xbf16>
    %28 = vector.shape_cast %27 : vector<1x80x128xbf16> to vector<80x128xbf16>
    %cst_26 = arith.constant dense<0.000000e+00> : vector<16x128xf32>
    %29 = tpu.matmul %26, %28, %cst_26 {dimension_numbers = #tpu.dot_dimension_numbers<[1], [0], [0], [1], [0, 0, 1, 1], [], []>} : vector<16x80xbf16>, vector<80x128xbf16>, vector<16x128xf32> -> vector<16x128xf32>
    %30 = arith.addf %24, %29 : vector<16x128xf32>
    %c4 = arith.constant 4 : index
    %c0_27 = arith.constant 0 : index
    %31 = vector.load %arg10[%c4, %c0_27] : memref<20x80xf32, #tpu.memory_space<vmem>>, vector<16x80xf32>
    %32 = arith.truncf %31 : vector<16x80xf32> to vector<16x80xbf16>
    %c4_28 = arith.constant 4 : index
    %c0_29 = arith.constant 0 : index
    %c0_30 = arith.constant 0 : index
    %33 = vector.load %arg2[%c4_28, %c0_29, %c0_30] : memref<5x80x128xbf16, #tpu.memory_space<vmem>>, vector<1x80x128xbf16>
    %34 = vector.shape_cast %33 : vector<1x80x128xbf16> to vector<80x128xbf16>
    %cst_31 = arith.constant dense<0.000000e+00> : vector<16x128xf32>
    %35 = tpu.matmul %32, %34, %cst_31 {dimension_numbers = #tpu.dot_dimension_numbers<[1], [0], [0], [1], [0, 0, 1, 1], [], []>} : vector<16x80xbf16>, vector<80x128xbf16>, vector<16x128xf32> -> vector<16x128xf32>
    %36 = arith.addf %30, %35 : vector<16x128xf32>
    %c0_32 = arith.constant 0 : index
    %c0_33 = arith.constant 0 : index
    %37 = vector.load %arg3[%c0_32, %c0_33] : memref<1x128xf32, #tpu.memory_space<vmem>>, vector<1x128xf32>
    %38 = vector.broadcast %37 : vector<1x128xf32> to vector<16x128xf32>
    %39 = arith.addf %36, %38 : vector<16x128xf32>
    %cst_34 = arith.constant 0.000000e+00 : f32
    %40 = vector.broadcast %cst_34 : f32 to vector<16x128xf32>
    %41 = arith.maximumf %39, %40 : vector<16x128xf32>
    %c0_35 = arith.constant 0 : index
    %c0_36 = arith.constant 0 : index
    %c0_37 = arith.constant 0 : index
    %42 = vector.load %arg8[%c0_35, %c0_36, %c0_37] : memref<1x16x128xf32, #tpu.memory_space<vmem>>, vector<1x16x128xf32>
    %43 = vector.shape_cast %42 : vector<1x16x128xf32> to vector<16x128xf32>
    %44 = vector.shape_cast %41 : vector<16x128xf32> to vector<1x16x128xf32>
    tpu.vector_store %arg8[%c0_35, %c0_36, %c0_37], %44 {strides = array<i32>} : memref<1x16x128xf32, #tpu.memory_space<vmem>>, vector<1x16x128xf32>,
    %c0_38 = arith.constant 0 : index
    %c0_39 = arith.constant 0 : index
    %45 = vector.load %arg4[%c0_38, %c0_39] : memref<8x16xf32, #tpu.memory_space<vmem>>, vector<8x16xf32>
    %cst_40 = arith.constant dense<0.000000e+00> : vector<8x128xf32>
    %46 = tpu.matmul %45, %41, %cst_40 {dimension_numbers = #tpu.dot_dimension_numbers<[1], [0], [0], [1], [0, 0, 1, 1], [], []>} : vector<8x16xf32>, vector<16x128xf32>, vector<8x128xf32> -> vector<8x128xf32>
    %c0_41 = arith.constant 0 : index
    %c0_42 = arith.constant 0 : index
    %47 = vector.load %arg5[%c0_41, %c0_42] : memref<8x16xf32, #tpu.memory_space<vmem>>, vector<8x16xf32>
    %cst_43 = arith.constant dense<0.000000e+00> : vector<8x128xf32>
    %48 = tpu.matmul %47, %41, %cst_43 {dimension_numbers = #tpu.dot_dimension_numbers<[1], [0], [0], [1], [0, 0, 1, 1], [], []>} : vector<8x16xf32>, vector<16x128xf32>, vector<8x128xf32> -> vector<8x128xf32>
    %49 = arith.maximumf %46, %48 : vector<8x128xf32>
    %c0_44 = arith.constant 0 : index
    %c0_45 = arith.constant 0 : index
    %50 = vector.load %arg6[%c0_44, %c0_45] : memref<128x64xf32, #tpu.memory_space<vmem>>, vector<128x64xf32>
    %cst_46 = arith.constant dense<0.000000e+00> : vector<8x64xf32>
    %51 = tpu.matmul %49, %50, %cst_46 {dimension_numbers = #tpu.dot_dimension_numbers<[1], [0], [0], [1], [0, 0, 1, 1], [], []>} : vector<8x128xf32>, vector<128x64xf32>, vector<8x64xf32> -> vector<8x64xf32>
    %c0_47 = arith.constant 0 : index
    %c0_48 = arith.constant 0 : index
    %52 = vector.load %arg7[%c0_47, %c0_48] : memref<128x64xf32, #tpu.memory_space<vmem>>, vector<128x64xf32>
    %cst_49 = arith.constant dense<0.000000e+00> : vector<8x64xf32>
    %53 = tpu.matmul %49, %52, %cst_49 {dimension_numbers = #tpu.dot_dimension_numbers<[1], [0], [0], [1], [0, 0, 1, 1], [], []>} : vector<8x128xf32>, vector<128x64xf32>, vector<8x64xf32> -> vector<8x64xf32>
    %54 = arith.maximumf %51, %53 : vector<8x64xf32>
    %c0_50 = arith.constant 0 : index
    %c0_51 = arith.constant 0 : index
    %c0_52 = arith.constant 0 : index
    %55 = vector.load %arg9[%c0_50, %c0_51, %c0_52] : memref<1x8x64xf32, #tpu.memory_space<vmem>>, vector<1x8x64xf32>
    %56 = vector.shape_cast %55 : vector<1x8x64xf32> to vector<8x64xf32>
    %57 = vector.shape_cast %54 : vector<8x64xf32> to vector<1x8x64xf32>
    tpu.vector_store %arg9[%c0_50, %c0_51, %c0_52], %57 {strides = array<i32>} : memref<1x8x64xf32, #tpu.memory_space<vmem>>, vector<1x8x64xf32>,
    return
  }
  func.func @transform_0(%arg0: i32) -> (i32, i32, i32) {
    %c0_i32 = arith.constant 0 : i32
    %c0_i32_0 = arith.constant 0 : i32
    %c0_i32_1 = arith.constant 0 : i32
    return %arg0, %c0_i32, %c0_i32_0 : i32, i32, i32
  }
  func.func @transform_1(%arg0: i32) -> (i32, i32, i32) {
    %c0_i32 = arith.constant 0 : i32
    %c0_i32_0 = arith.constant 0 : i32
    %c0_i32_1 = arith.constant 0 : i32
    %c0_i32_2 = arith.constant 0 : i32
    return %c0_i32, %c0_i32_0, %c0_i32_1 : i32, i32, i32
  }
  func.func @transform_2(%arg0: i32) -> (i32, i32) {
    %c0_i32 = arith.constant 0 : i32
    %c0_i32_0 = arith.constant 0 : i32
    %c0_i32_1 = arith.constant 0 : i32
    return %c0_i32, %c0_i32_0 : i32, i32
  }
  func.func @transform_3(%arg0: i32) -> (i32, i32) {
    %c0_i32 = arith.constant 0 : i32
    %c0_i32_0 = arith.constant 0 : i32
    %c0_i32_1 = arith.constant 0 : i32
    return %c0_i32, %c0_i32_0 : i32, i32
  }
  func.func @transform_4(%arg0: i32) -> (i32, i32) {
    %c0_i32 = arith.constant 0 : i32
    %c0_i32_0 = arith.constant 0 : i32
    %c0_i32_1 = arith.constant 0 : i32
    return %c0_i32, %c0_i32_0 : i32, i32
  }
  func.func @transform_5(%arg0: i32) -> (i32, i32) {
    %c0_i32 = arith.constant 0 : i32
    %c0_i32_0 = arith.constant 0 : i32
    %c0_i32_1 = arith.constant 0 : i32
    return %c0_i32, %c0_i32_0 : i32, i32
  }
  func.func @transform_6(%arg0: i32) -> (i32, i32) {
    %c0_i32 = arith.constant 0 : i32
    %c0_i32_0 = arith.constant 0 : i32
    %c0_i32_1 = arith.constant 0 : i32
    return %c0_i32, %c0_i32_0 : i32, i32
  }
  func.func @transform_7(%arg0: i32) -> (i32, i32, i32) {
    %c0_i32 = arith.constant 0 : i32
    %c0_i32_0 = arith.constant 0 : i32
    %c0_i32_1 = arith.constant 0 : i32
    return %arg0, %c0_i32, %c0_i32_0 : i32, i32, i32
  }
  func.func @transform_8(%arg0: i32) -> (i32, i32, i32) {
    %c0_i32 = arith.constant 0 : i32
    %c0_i32_0 = arith.constant 0 : i32
    %c0_i32_1 = arith.constant 0 : i32
    return %arg0, %c0_i32, %c0_i32_0 : i32, i32, i32
  }
}

</mosaic_0001>

<bundles_post_ra>
// kernel: tile.8
= control target key start
LH: loop header
LB: loop body
LE: loop exit
PB: predicated region body
PF: predicated region fallthrough
CT: control target
= control target key end

     0   :  { %s28_s0 = inlined_call_operand.vmem [shape: f32[8], index: 0, kind: input, shape index: {}]   ;;  %s29_s1 = inlined_call_operand.vmem [shape: f32[16,8], index: 1, kind: output, shape index: {}]  }
   0x1   :  { %v4_v0 = vld [vmem:[%s28_s0] ss:$0 sm:$0xff] }
   0x2   :  { %5 = vst [vmem:[%s29_s1] sm:$0xff] %v4_v0  ;;  %8 = vst [vmem:[%s29_s1 + $0x8] sm:$0xff] %v4_v0 }

// kernel: tile.9
= control target key start
LH: loop header
LB: loop body
LE: loop exit
PB: predicated region body
PF: predicated region fallthrough
CT: control target
= control target key end

     0   :  { %s133_s10 = smov 120   ;;  %s134_s11 = smov 104   ;;  %vm3_vm0 = vcmask 64512   ;;  %vm9_vm1 = vcmask 1048512   ;;  %vm15_vm2 = vcmask 982912   ;;  %vm21_vm3 = vcmask 917312   ;;  %s209_s0 = inlined_call_operand.vmem [shape: f32[16,8], index: 0, kind: input, shape index: {}]   ;;  %s210_s1 = inlined_call_operand.vmem [shape: f32[1,128], index: 1, kind: output, shape index: {}]  }
   0x1   :  { %v103_v0 = vld [vmem:[%s209_s0 + $0xf] sm:$0x1]   ;;  %v105_v1 = vld [vmem:[%s209_s0 + $0xd] sm:$0x1]   ;;  %v104_v2 = vld [vmem:[%s209_s0 + $0xe] sm:$0x1]  }
   0x2   :  { %7 = vrot.lane.b32.xlu0 %v103_v0, %s133_s10  ;;  %19 = vrot.lane.b32.xlu1 %v105_v1, %s134_s11  ;;  %v106_v3 = vld [vmem:[%s209_s0 + $0xc] sm:$0x1]   ;;  %s135_s16 = smov 112   ;;  %s136_s17 = smov 96   ;;  %v107_v4 = vld [vmem:[%s209_s0 + $0xb] sm:$0x1]  }
   0x3   :  { %v108_v5 = vld [vmem:[%s209_s0 + $0xa] sm:$0x1]   ;;  %v2_v6 = vld [vmem:[%s209_s0] sm:$0x1]   ;;  %s137_s24 = smov 88   ;;  %s138_s25 = smov 80  }
   0x4   :  { %4 = vst.msk [vmem:[#allocation0] sm:$0x1] %vm3_vm0, %v2_v6   ;;  %v109_v7 = vld [vmem:[%s209_s0 + $0x9] sm:$0x1]   ;;  %v110_v8 = vld [vmem:[%s209_s0 + $0x8] sm:$0x1]  }
   0x5   :  { %s139_s30 = smov 72   ;;  %s140_s2 = smov 64   ;;  %v111_v9 = vld [vmem:[%s209_s0 + $0x7] sm:$0x1]   ;;  %v112_v10 = vld [vmem:[%s209_s0 + $0x6] sm:$0x1]  }
   0x6   :  { %13 = vrot.lane.b32.xlu0 %v104_v2, %s135_s16  ;;  %25 = vrot.lane.b32.xlu1 %v106_v3, %s136_s17  ;;  %s141_s7 = smov 56   ;;  %s142_s8 = smov 48   ;;  %v113_v11 = vld [vmem:[%s209_s0 + $0x5] sm:$0x1]   ;;  %v114_v12 = vld [vmem:[%s209_s0 + $0x4] sm:$0x1]  }
   0x7   :  { %s143_s13 = smov 40   ;;  %s144_s14 = smov 32   ;;  %v115_v13 = vld [vmem:[%s209_s0 + $0x3] sm:$0x1]   ;;  %v116_v14 = vld [vmem:[%s209_s0 + $0x2] sm:$0x1]  }
   0x8   :  { %s145_s19 = smov 24   ;;  %s146_s20 = smov 16   ;;  %v117_v15 = vld [vmem:[%s209_s0 + $0x1] sm:$0x1]   ;;  %vm27_vm4 = vcmask 851712   ;;  %vm33_vm5 = vcmask 786112  }
   0x9   :  { %s147_s0 = smov 8   ;;  %vm39_vm6 = vcmask 720512   ;;  %vm45_vm7 = vcmask 654912   ;;  %vm51_vm8 = vcmask 589312   ;;  %vm57_vm9 = vcmask 523712  }
   0xa   :  { %31 = vrot.lane.b32.xlu0 %v107_v4, %s137_s24  ;;  %37 = vrot.lane.b32.xlu1 %v108_v5, %s138_s25  ;;  %vm63_vm10 = vcmask 458112   ;;  %vm69_vm11 = vcmask 392512   ;;  %vm75_vm12 = vcmask 326912   ;;  %vm81_vm13 = vcmask 261312  }
   0xb   :  { %vm87_vm14 = vcmask 195712   ;;  %vm93_vm15 = vcmask 130112  }
   0xe   :  { %43 = vrot.lane.b32.xlu0 %v109_v7, %s139_s30  ;;  %49 = vrot.lane.b32.xlu1 %v110_v8, %s140_s2 }
  0x12   :  { %55 = vrot.lane.b32.xlu0 %v111_v9, %s141_s7  ;;  %61 = vrot.lane.b32.xlu1 %v112_v10, %s142_s8 }
  0x16   :  { %67 = vrot.lane.b32.xlu0 %v113_v11, %s143_s13  ;;  %73 = vrot.lane.b32.xlu1 %v114_v12, %s144_s14 }
  0x1a   :  { %79 = vrot.lane.b32.xlu0 %v115_v13, %s145_s19  ;;  %85 = vrot.lane.b32.xlu1 %v116_v14, %s146_s20 }
  0x1e   :  { %91 = vrot.lane.b32.xlu0 %v117_v15, %s147_s0 }
  0x74   :  { %v8_v16 = vpop.permute.xlu0 %7   ;;  %v20_v17 = vpop.permute.xlu1 %19  }
  0x75   :  { %10 = vst.msk [vmem:[#allocation0] sm:$0x1] %vm9_vm1, %v8_v16  }
  0x78   :  { %v14_v18 = vpop.permute.xlu0 %13   ;;  %v26_v19 = vpop.permute.xlu1 %25  }
  0x79   :  { %16 = vst.msk [vmem:[#allocation0] sm:$0x1] %vm15_vm2, %v14_v18  }
  0x7a   :  { %22 = vst.msk [vmem:[#allocation0] sm:$0x1] %vm21_vm3, %v20_v17  }
  0x7b   :  { %28 = vst.msk [vmem:[#allocation0] sm:$0x1] %vm27_vm4, %v26_v19  }
  0x7c   :  { %v32_v20 = vpop.permute.xlu0 %31   ;;  %v38_v21 = vpop.permute.xlu1 %37  }
  0x7d   :  { %34 = vst.msk [vmem:[#allocation0] sm:$0x1] %vm33_vm5, %v32_v20  }
  0x7e   :  { %40 = vst.msk [vmem:[#allocation0] sm:$0x1] %vm39_vm6, %v38_v21  }
  0x80   :  { %v44_v22 = vpop.permute.xlu0 %43   ;;  %v50_v23 = vpop.permute.xlu1 %49  }
  0x81   :  { %46 = vst.msk [vmem:[#allocation0] sm:$0x1] %vm45_vm7, %v44_v22  }
  0x82   :  { %52 = vst.msk [vmem:[#allocation0] sm:$0x1] %vm51_vm8, %v50_v23  }
  0x84   :  { %v56_v24 = vpop.permute.xlu0 %55   ;;  %v62_v25 = vpop.permute.xlu1 %61  }
  0x85   :  { %58 = vst.msk [vmem:[#allocation0] sm:$0x1] %vm57_vm9, %v56_v24  }
  0x86   :  { %64 = vst.msk [vmem:[#allocation0] sm:$0x1] %vm63_vm10, %v62_v25  }
  0x88   :  { %v68_v26 = vpop.permute.xlu0 %67   ;;  %v74_v27 = vpop.permute.xlu1 %73  }
  0x89   :  { %70 = vst.msk [vmem:[#allocation0] sm:$0x1] %vm69_vm11, %v68_v26  }
  0x8a   :  { %76 = vst.msk [vmem:[#allocation0] sm:$0x1] %vm75_vm12, %v74_v27  }
  0x8c   :  { %v80_v28 = vpop.permute.xlu0 %79   ;;  %v86_v29 = vpop.permute.xlu1 %85  }
  0x8d   :  { %82 = vst.msk [vmem:[#allocation0] sm:$0x1] %vm81_vm13, %v80_v28  }
  0x8e   :  { %88 = vst.msk [vmem:[#allocation0] sm:$0x1] %vm87_vm14, %v86_v29  }
  0x90   :  { %v92_v30 = vpop.permute.xlu0 %91  }
  0x91   :  { %94 = vst.msk [vmem:[#allocation0] sm:$0x1] %vm93_vm15, %v92_v30  }
  0x98   :  { %v99_v31 = vld [vmem:[#allocation0] sm:$0x1] }
  0x99   :  { %102 = vst [vmem:[%s210_s1] sm:$0x1] %v99_v31 }

// kernel: enc_layer_forward.1
= control target key start
LH: loop header
LB: loop body
LE: loop exit
PB: predicated region body
PF: predicated region fallthrough
CT: control target
= control target key end

     0   :  { %s1619_s27 = smov 0   ;;  %s1916_s0 = inlined_call_operand.vmem [shape: bf16[2,16,64], index: 0, kind: input, shape index: {}]   ;;  %s1917_s1 = inlined_call_operand.vmem [shape: bf16[5,80,128], index: 1, kind: input, shape index: {}]   ;;  %s1918_s2 = inlined_call_operand.vmem [shape: f32[1,128], index: 2, kind: input, shape index: {}]   ;;  %s1919_s3 = inlined_call_operand.vmem [shape: f32[8,16], index: 3, kind: input, shape index: {}]   ;;  %s1920_s4 = inlined_call_operand.vmem [shape: f32[8,16], index: 4, kind: input, shape index: {}]   ;;  %s1921_s5 = inlined_call_operand.vmem [shape: f32[128,64], index: 5, kind: input, shape index: {}]   ;;  %s1922_s6 = inlined_call_operand.vmem [shape: f32[128,64], index: 6, kind: input, shape index: {}]   ;;  %s1923_s7 = inlined_call_operand.vmem [shape: f32[2,16,128], index: 7, kind: output, shape index: {0}]   ;;  %s1924_s8 = inlined_call_operand.vmem [shape: f32[2,8,64], index: 8, kind: output, shape index: {1}]  }
   0x1 LB: > { %s1207_s28 = sadd.s32 4294967295, %s1569_s27   ;;  %p1211_p0 = scmp.ge.s32.totalorder %s1569_s27, 1  ;;  %s1569_s27 = sphi %s1619_s27, %s19_s27  }
   0x2   : > { %p265_p1 = scmp.lt.s32.totalorder %s1569_s27, 3 }
   0x4   : > { %p266_p2 = pnand %p1211_p0, %p265_p1 }
   0x5   : > { %p303_p3 = scmp.lt.s32.totalorder (!%p266_p2), %s1207_s28, 1  ;;  %s1573_s25 = smov (!%p266_p2), 8  }
   0x6   : > { %269 = sbr.rel (%p266_p2) target bundleno = 787 (0x313), region = 48 }
   0xb   : > { %v1538_v0 = vld [vmem:[%s1917_s1 + $0x48] sm:$0xff]   ;;  %v1571_v1 = vmov 0.0   ;;  %s1926_s28 = smov (!%p303_p3, %s1207_s28), 1  ;;  %v1539_v2 = vld [vmem:[%s1917_s1 + $0x20] sm:$0xff]   ;;  %vm318_vm0 = vcmask 654336   ;;  %v1541_v4 = vld [vmem:[%s1917_s1 + $0x18] sm:$0xff]  }
   0xc   : > { %1368 = vmatprep.subr.bf16.mxu0 %v1571_v1  ;;  %1382 = vmatprep.subr.bf16.mxu1 %v1571_v1  ;;  %v1540_v3 = vld [vmem:[%s1917_s1 + $0x40] sm:$0xff]   ;;  %s1292_s13 = sshll.u32 %s1926_s28, 3  ;;  %319 = vst.msk [vmem:[#allocation2] sm:$0xff] %vm318_vm0, %v1571_v1  ;;  %320 = vst.msk [vmem:[#allocation2 + $0x8] sm:$0xff] %vm318_vm0, %v1571_v1  ;;  %vm321_vm1 = vcmask 650240   ;;  %v1542_v6 = vld [vmem:[%s1917_s1 + $0x38] sm:$0xff]  }
   0xd   : > { %1369 = vmatpush3.bf16.msra.mxu0 %v1538_v0  ;;  %1383 = vmatpush3.bf16.msra.mxu1 %v1539_v2  ;;  %s307_s18 = scalar_lea.vmem %s1916_s0, %s1292_s13  ;;  %322 = vst.msk [vmem:[#allocation2 + $0x10] sm:$0xf] %vm321_vm1, %v1571_v1  ;;  %vm1572_vm2 = vmmov 0   ;;  %v1543_v9 = vld [vmem:[%s1917_s1 + $0x10] sm:$0xff]   ;;  %v1545_v12 = vld [vmem:[%s1917_s1 + $0x8] sm:$0xff]   ;;  %v1547_v14 = vld [vmem:[%s1917_s1] sm:$0xff]   ;;  %s316_s24 = scalar_lea.vmem %s1924_s8, %s1292_s13 }
   0xe   : > { %1370 = vmatprep.subr.bf16.mxu0 %v1571_v1  ;;  %1384 = vmatprep.subr.bf16.mxu1 %v1571_v1  ;;  %v1295_v5 = vld [vmem:[%s307_s18] sm:$0xff]   ;;  %v1544_v11 = vld [vmem:[%s1917_s1 + $0x30] sm:$0xff]   ;;  %v1546_v13 = vld [vmem:[%s1917_s1 + $0x28] sm:$0xff]   ;;  %vm335_vm3 = vcmask 588864   ;;  %s1293_s11 = sshll.u32 %s1926_s28, 4  ;;  %vm797_vm4 = vcmask 130048  }
   0xf   : > { %1378 = vmatprep.mubr.msk.bf16.mxu0 %vm1572_vm2, %v1571_v1  ;;  %v1296_v7 = vunpack.c.l.bf16 %v1295_v5  ;;  %v1297_v8 = vunpack.c.h.bf16 %v1295_v5  ;;  %1392 = vmatprep.mubr.msk.bf16.mxu1 %vm1572_vm2, %v1571_v1  ;;  %v1548_v18 = vld [vmem:[%s1917_s1 + $0x70] sm:$0xff]   ;;  %v1549_v24 = vld [vmem:[%s1917_s1 + $0x98] sm:$0xff]   ;;  %v1550_v26 = vld [vmem:[%s1917_s1 + $0x68] sm:$0xff]   ;;  %s312_s15 = scalar_lea.vmem %s1923_s7, %s1293_s11  ;;  %vm1119_vm5 = vcmask 523264  }
  0x10   : > { %v1551_v27 = vld [vmem:[%s1917_s1 + $0x90] sm:$0xff]   ;;  %v1552_v28 = vld [vmem:[%s1917_s1 + $0x60] sm:$0xff]   ;;  %v1553_v29 = vld [vmem:[%s1917_s1 + $0x88] sm:$0xff]  }
  0x11   : > { %1371 = vmatpush3.bf16.msra.mxu0 %v1540_v3  ;;  %1385 = vmatpush3.bf16.msra.mxu1 %v1541_v4  ;;  %v1533_v10 = vpack.i.bf16 %v1297_v8, %v1296_v7  ;;  %v1554_v30 = vld [vmem:[%s1917_s1 + $0x58] sm:$0xff]   ;;  %v1555_v31 = vld [vmem:[%s1917_s1 + $0x80] sm:$0xff]   ;;  %v1556_v32 = vld [vmem:[%s1917_s1 + $0x50] sm:$0xff]  }
  0x12   : > { %1372 = vmatprep.subr.bf16.mxu0 %v1571_v1  ;;  %1386 = vmatprep.subr.bf16.mxu1 %v1571_v1  ;;  %v1557_v33 = vld [vmem:[%s1917_s1 + $0x78] sm:$0xff]   ;;  %v1558_v38 = vld [vmem:[%s1917_s1 + $0xc0] sm:$0xff]   ;;  %v1560_v42 = vld [vmem:[%s1917_s1 + $0xb0] sm:$0xff]  }
  0x13   : > { %1534 = vrot.lane.b32.xlu0 %v1533_v10, %s1573_s25  ;;  %v1559_v41 = vld [vmem:[%s1917_s1 + $0xb8] sm:$0xff]   ;;  %v1561_v43 = vld [vmem:[%s1917_s1 + $0xa8] sm:$0xff]   ;;  %v1562_v44 = vld [vmem:[%s1917_s1 + $0xa0] sm:$0xff]  }
  0x14   : > { %v1047_v48 = vld [vmem:[%s1922_s6 + $0x78] sm:$0xff]  ;;  %v1046_v49 = vld [vmem:[%s1922_s6 + $0x70] sm:$0xff]  ;;  %v1045_v50 = vld [vmem:[%s1922_s6 + $0x68] sm:$0xff] }
  0x15   : > { %1373 = vmatpush3.bf16.msra.mxu0 %v1542_v6  ;;  %1387 = vmatpush3.bf16.msra.mxu1 %v1543_v9  ;;  %v1044_v51 = vld [vmem:[%s1922_s6 + $0x60] sm:$0xff]  ;;  %v1043_v52 = vld [vmem:[%s1922_s6 + $0x58] sm:$0xff]  ;;  %v1042_v53 = vld [vmem:[%s1922_s6 + $0x50] sm:$0xff] }
  0x16   : > { %1374 = vmatprep.subr.bf16.mxu0 %v1571_v1  ;;  %1388 = vmatprep.subr.bf16.mxu1 %v1571_v1  ;;  %v1041_v54 = vld [vmem:[%s1922_s6 + $0x48] sm:$0xff]  ;;  %v1040_v55 = vld [vmem:[%s1922_s6 + $0x40] sm:$0xff]  ;;  %v1039_v56 = vld [vmem:[%s1922_s6 + $0x38] sm:$0xff] }
  0x17   : > { %v1038_v57 = vld [vmem:[%s1922_s6 + $0x30] sm:$0xff]  ;;  %v1037_v58 = vld [vmem:[%s1922_s6 + $0x28] sm:$0xff]  ;;  %v1036_v59 = vld [vmem:[%s1922_s6 + $0x20] sm:$0xff] }
  0x19   : > { %1375 = vmatpush3.bf16.msra.mxu0 %v1544_v11  ;;  %1389 = vmatpush3.bf16.msra.mxu1 %v1545_v12 }
  0x1a   : > { %1376 = vmatprep.subr.bf16.mxu0 %v1571_v1  ;;  %1390 = vmatprep.subr.bf16.mxu1 %v1571_v1 }
  0x1d   : > { %1377 = vmatpush3.bf16.msra.mxu0 %v1546_v13  ;;  %1391 = vmatpush3.bf16.msra.mxu1 %v1547_v14 }
  0x1e   : > { %1396 = vmatprep.subr.bf16.mxu0 %v1571_v1  ;;  %1410 = vmatprep.subr.bf16.mxu1 %v1571_v1 }
  0x85   : > { %v1535_v15 = vpop.permute.xlu0 %1534 }
  0x86   : > { %v1537_v16 = vunpack.i.h.bf16 %v1535_v15  ;;  %v1536_v17 = vunpack.i.l.bf16 %v1535_v15 }
  0x88   : > { %337 = vst.msk [vmem:[#allocation2 + $0xa] sm:$0xff] %vm335_vm3, %v1537_v16  ;;  %336 = vst.msk [vmem:[#allocation2 + $0x2] sm:$0xff] %vm335_vm3, %v1536_v17 }
  0x8f   : > { %v351_v19 = vld [vmem:[#allocation2 + $0x1] sm:$0xff]  ;;  %v352_v20 = vld [vmem:[#allocation2 + $0x9] sm:$0xff] }
  0x90   : > { %v338_v21 = vld [vmem:[#allocation2] sm:$0xff]  ;;  %v353_v22 = vpack.c.bf16 %v352_v20, %v351_v19  ;;  %v339_v23 = vld [vmem:[#allocation2 + $0x8] sm:$0xff] }
  0x91   : > { %v340_v25 = vpack.c.bf16 %v339_v23, %v338_v21  ;;  %v513_v34 = vld [vmem:[#allocation2 + $0x2] sm:$0xff]  ;;  %v514_v35 = vld [vmem:[#allocation2 + $0xa] sm:$0xff]  ;;  %v1287_v19 = vld [vmem:[%s1918_s2] ss:$0 sm:$0xff] }
  0x92   : > { %1379 = vmatmul.mubr.msk.bf16.vlgmr.msra.gmra.mxu0 %vm318_vm0, %v353_v22  ;;  %v603_v36 = vld [vmem:[#allocation2 + $0x3] sm:$0xff]  ;;  %v604_v37 = vld [vmem:[#allocation2 + $0xb] sm:$0xff]  ;;  %v515_v39 = vpack.c.bf16 %v514_v35, %v513_v34 }
  0x93   : > { %1393 = vmatmul.mubr.msk.bf16.vlgmr.msra.gmra.mxu1 %vm318_vm0, %v340_v25  ;;  %1397 = vmatpush3.bf16.msra.mxu0 %v1548_v18  ;;  %v605_v40 = vpack.c.bf16 %v604_v37, %v603_v36  ;;  %v693_v45 = vld [vmem:[#allocation2 + $0x4] sm:$0xff]  ;;  %v694_v46 = vld [vmem:[#allocation2 + $0xc] sm:$0xff]  ;;  %v957_v36 = vld [vmem:[%s1921_s5 + $0x58] sm:$0xff] }
  0x94   : > { %1411 = vmatpush3.bf16.msra.mxu1 %v1549_v24  ;;  %1398 = vmatprep.subr.bf16.mxu0 %v1571_v1  ;;  %v695_v47 = vpack.c.bf16 %v694_v46, %v693_v45  ;;  %v959_v34 = vld [vmem:[%s1921_s5 + $0x68] sm:$0xff]  ;;  %v958_v35 = vld [vmem:[%s1921_s5 + $0x60] sm:$0xff]  ;;  %v956_v37 = vld [vmem:[%s1921_s5 + $0x50] sm:$0xff] }
  0x95   : > { %1412 = vmatprep.subr.bf16.mxu1 %v1571_v1  ;;  %1406 = vmatprep.mubr.msk.bf16.mxu0 %vm1572_vm2, %v1571_v1  ;;  %v1035_v45 = vld [vmem:[%s1922_s6 + $0x18] sm:$0xff]  ;;  %v948_v46 = vld [vmem:[%s1921_s5 + $0x10] sm:$0xff] }
  0x96   : > { %1420 = vmatprep.mubr.msk.bf16.mxu1 %vm1572_vm2, %v1571_v1 }
  0x97   : > { %1399 = vmatpush3.bf16.msra.mxu0 %v1550_v26 }
  0x98   : > { %1413 = vmatpush3.bf16.msra.mxu1 %v1551_v27  ;;  %1400 = vmatprep.subr.bf16.mxu0 %v1571_v1 }
  0x99   : > { %1414 = vmatprep.subr.bf16.mxu1 %v1571_v1 }
  0x9b   : > { %1401 = vmatpush3.bf16.msra.mxu0 %v1552_v28 }
  0x9c   : > { %1415 = vmatpush3.bf16.msra.mxu1 %v1553_v29  ;;  %1402 = vmatprep.subr.bf16.mxu0 %v1571_v1 }
  0x9d   : > { %1416 = vmatprep.subr.bf16.mxu1 %v1571_v1 }
  0x9f   : > { %1403 = vmatpush3.bf16.msra.mxu0 %v1554_v30  ;;  %v796_v30 = vld [vmem:[%s1919_s3] sm:$0xff] }
  0xa0   : > { %1417 = vmatpush3.bf16.msra.mxu1 %v1555_v31  ;;  %1404 = vmatprep.subr.bf16.mxu0 %v1571_v1  ;;  %v871_v31 = vld [vmem:[%s1920_s4] sm:$0xff] }
  0xa1   : > { %1418 = vmatprep.subr.bf16.mxu1 %v1571_v1 }
  0xa3   : > { %1405 = vmatpush3.bf16.msra.mxu0 %v1556_v32  ;;  %v961_v32 = vld [vmem:[%s1921_s5 + $0x78] sm:$0xff] }
  0xa4   : > { %1419 = vmatpush3.bf16.msra.mxu1 %v1557_v33  ;;  %1424 = vmatprep.subr.bf16.mxu0 %v1571_v1  ;;  %v960_v33 = vld [vmem:[%s1921_s5 + $0x70] sm:$0xff] }
  0xa5   : > { %1438 = vmatprep.subr.mxu1 %v1571_v1 }
  0xa6   : > { %1407 = vmatmul.mubr.msk.bf16.vlgmr.msra.gmra.mxu0 %vm318_vm0, %v515_v39  ;;  %v954_v39 = vld [vmem:[%s1921_s5 + $0x40] sm:$0xff] }
  0xa7   : > { %1421 = vmatmul.mubr.msk.bf16.vlgmr.msra.gmra.mxu1 %vm318_vm0, %v605_v40  ;;  %1425 = vmatpush3.bf16.msra.mxu0 %v1558_v38  ;;  %v955_v38 = vld [vmem:[%s1921_s5 + $0x48] sm:$0xff]  ;;  %v953_v40 = vld [vmem:[%s1921_s5 + $0x38] sm:$0xff] }
  0xa8   : > { %1426 = vmatprep.subr.bf16.mxu0 %v1571_v1  ;;  %1434 = vmatprep.mubr.msk.bf16.mxu0 %vm1572_vm2, %v1571_v1 }
  0xa9   : > { %1442 = vmatprep.mubr.msk.f32.mxu1 %vm1572_vm2, %v1571_v1 }
  0xab   : > { %1427 = vmatpush3.bf16.msra.mxu0 %v1559_v41  ;;  %v952_v41 = vld [vmem:[%s1921_s5 + $0x30] sm:$0xff] }
  0xac   : > { %1428 = vmatprep.subr.bf16.mxu0 %v1571_v1 }
  0xaf   : > { %1429 = vmatpush3.bf16.msra.mxu0 %v1560_v42  ;;  %v951_v42 = vld [vmem:[%s1921_s5 + $0x28] sm:$0xff] }
  0xb0   : > { %1430 = vmatprep.subr.bf16.mxu0 %v1571_v1 }
  0xb3   : > { %1431 = vmatpush3.bf16.msra.mxu0 %v1561_v43  ;;  %v950_v43 = vld [vmem:[%s1921_s5 + $0x20] sm:$0xff] }
  0xb4   : > { %1432 = vmatprep.subr.bf16.mxu0 %v1571_v1 }
  0xb7   : > { %1433 = vmatpush3.bf16.msra.mxu0 %v1562_v44  ;;  %v949_v44 = vld [vmem:[%s1921_s5 + $0x18] sm:$0xff] }
  0xb8   : > { %1487 = vmatprep.subr.mxu0 %v1571_v1 }
  0xba   : > { %1435 = vmatmul.mubr.msk.bf16.vlgmr.msra.gmra.mxu0 %vm318_vm0, %v695_v47  ;;  %v1034_v47 = vld [vmem:[%s1922_s6 + $0x10] sm:$0xff] }
  0xbb   : > { %1519 = vmatprep.mubr.msk.f32.mxu0 %vm1572_vm2, %v1571_v1  ;;  %1488 = vmatpush3.msra.mxu0 %v1047_v48  ;;  %v947_v48 = vld [vmem:[%s1921_s5 + $0x8] sm:$0xff] }
  0xbc   : > { %1489 = vmatprep.subr.mxu0 %v1571_v1 }
  0xbd   : > { %1490 = vmatpush3.msra.mxu0 %v1046_v49  ;;  %v1033_v49 = vld [vmem:[%s1922_s6 + $0x8] sm:$0xff] }
  0xbe   : > { %1491 = vmatprep.subr.mxu0 %v1571_v1 }
  0xbf   : > { %1492 = vmatpush3.msra.mxu0 %v1045_v50  ;;  %v946_v50 = vld [vmem:[%s1921_s5] sm:$0xff] }
  0xc0   : > { %1493 = vmatprep.subr.mxu0 %v1571_v1 }
  0xc1   : > { %1494 = vmatpush3.msra.mxu0 %v1044_v51  ;;  %v1032_v51 = vld [vmem:[%s1922_s6] sm:$0xff] }
  0xc2   : > { %1495 = vmatprep.subr.mxu0 %v1571_v1 }
  0xc3   : > { %1496 = vmatpush3.msra.mxu0 %v1043_v52 }
  0xc4   : > { %1497 = vmatprep.subr.mxu0 %v1571_v1 }
  0xc5   : > { %1498 = vmatpush3.msra.mxu0 %v1042_v53 }
  0xc6   : > { %1499 = vmatprep.subr.mxu0 %v1571_v1 }
  0xc7   : > { %1500 = vmatpush3.msra.mxu0 %v1041_v54 }
  0xc8   : > { %1501 = vmatprep.subr.mxu0 %v1571_v1 }
  0xc9   : > { %1502 = vmatpush3.msra.mxu0 %v1040_v55 }
  0xca   : > { %1503 = vmatprep.subr.mxu0 %v1571_v1 }
  0xcb   : > { %1504 = vmatpush3.msra.mxu0 %v1039_v56 }
  0xcc   : > { %1505 = vmatprep.subr.mxu0 %v1571_v1 }
  0xcd   : > { %1506 = vmatpush3.msra.mxu0 %v1038_v57 }
  0xce   : > { %1507 = vmatprep.subr.mxu0 %v1571_v1 }
  0xcf   : > { %1508 = vmatpush3.msra.mxu0 %v1037_v58 }
  0xd0   : > { %1509 = vmatprep.subr.mxu0 %v1571_v1 }
  0xd1   : > { %1510 = vmatpush3.msra.mxu0 %v1036_v59 }
  0xd2   : > { %1511 = vmatprep.subr.mxu0 %v1571_v1 }
  0xd3   : > { %1512 = vmatpush3.msra.mxu0 %v1035_v45 }
  0xd4   : > { %1513 = vmatprep.subr.mxu0 %v1571_v1 }
  0xd5   : > { %1514 = vmatpush3.msra.mxu0 %v1034_v47 }
  0xd6   : > { %1515 = vmatprep.subr.mxu0 %v1571_v1 }
  0xd7   : > { %1516 = vmatpush3.msra.mxu0 %v1033_v49 }
  0xd8   : > { %1517 = vmatprep.subr.mxu0 %v1571_v1 }
  0xd9   : > { %1518 = vmatpush3.msra.mxu0 %v1032_v51 }
 0x152   : > { %v432_v60 = vpop.f32.mrf.mxu0 }
 0x153   : > { %v506_v61 = vpop.f32.mrf.mxu1 }
 0x154   : > { %v1380_v62 = vpop.f32.mrf.mxu0  ;;  %v507_v13 = vadd.f32 %v506_v61, %v432_v60 }
 0x155   : > { %v1394_v63 = vpop.f32.mrf.mxu1 }
 0x156   : > { %v435_v0 = vpop.f32.mrf.mxu0 }
 0x157   : > { %v509_v2 = vpop.f32.mrf.mxu1 }
 0x158   : > { %v1381_v3 = vpop.f32.mrf.mxu0  ;;  %v510_v15 = vadd.f32 %v509_v2, %v435_v0 }
 0x159   : > { %v1395_v4 = vpop.f32.mrf.mxu1 }
 0x166   : > { %v594_v5 = vpop.f32.mrf.mxu0 }
 0x167   : > { %v684_v6 = vpop.f32.mrf.mxu1  ;;  %v601_v14 = vadd.f32 %v594_v5, %v507_v13 }
 0x168   : > { %v1408_v7 = vpop.f32.mrf.mxu0 }
 0x169   : > { %v1422_v8 = vpop.f32.mrf.mxu1  ;;  %v691_v16 = vadd.f32 %v684_v6, %v601_v14 }
 0x16a   : > { %v597_v9 = vpop.f32.mrf.mxu0 }
 0x16b   : > { %v687_v10 = vpop.f32.mrf.mxu1  ;;  %v602_v17 = vadd.f32 %v597_v9, %v510_v15 }
 0x16c   : > { %v1409_v11 = vpop.f32.mrf.mxu0 }
 0x16d   : > { %v1423_v12 = vpop.f32.mrf.mxu1  ;;  %v692_v22 = vadd.f32 %v687_v10, %v602_v17 }
 0x17a   : > { %v774_v18 = vpop.f32.mrf.mxu0 }
 0x17b   : > { %v781_v20 = vadd.f32 %v774_v18, %v691_v16 }
 0x17c   : > { %v1436_v21 = vpop.f32.mrf.mxu0 }
 0x17d   : > { %v790_v23 = vadd.f32 %v1287_v19, %v781_v20 }
 0x17e   : > { %v777_v24 = vpop.f32.mrf.mxu0 }
 0x17f   : > { %v792_v25 = vmax.f32 %v790_v23, 0.0  ;;  %v782_v26 = vadd.f32 %v777_v24, %v692_v22 }
 0x180   : > { %v1437_v27 = vpop.f32.mrf.mxu0 }
 0x181   : > { %794 = vst [vmem:[%s312_s15] sm:$0xff] %v792_v25  ;;  %v791_v28 = vadd.f32 %v1287_v19, %v782_v26 }
 0x183   : > { %v793_v29 = vmax.f32 %v791_v28, 0.0 }
 0x185   : > { %795 = vst [vmem:[%s312_s15 + $0x8] sm:$0xff] %v793_v29  ;;  %1439 = vmatpush3.msra.mxu1 %v793_v29 }
 0x186   : > { %1440 = vmatprep.subr.mxu1 %v1571_v1 }
 0x187   : > { %1441 = vmatpush3.msra.mxu1 %v792_v25 }
 0x188   : > { %1443 = vmatmul.mubr.msk.f32.vlgmr.msra.gmra.mxu1 %vm797_vm4, %v796_v30  ;;  %1445 = vmatprep.subr.mxu1 %v1571_v1 }
 0x189   : > { %1446 = vmatpush3.msra.mxu1 %v793_v29  ;;  %1449 = vmatprep.mubr.msk.f32.mxu1 %vm1572_vm2, %v1571_v1 }
 0x18a   : > { %1447 = vmatprep.subr.mxu1 %v1571_v1 }
 0x18b   : > { %1448 = vmatpush3.msra.mxu1 %v792_v25 }
 0x18c   : > { %1450 = vmatmul.mubr.msk.f32.vlgmr.msra.gmra.mxu1 %vm797_vm4, %v871_v31  ;;  %1452 = vmatprep.subr.mxu1 %v1571_v1 }
 0x18d   : > { %1453 = vmatpush3.msra.mxu1 %v961_v32  ;;  %1484 = vmatprep.mubr.msk.f32.mxu1 %vm1572_vm2, %v1571_v1 }
 0x18e   : > { %1454 = vmatprep.subr.mxu1 %v1571_v1 }
 0x18f   : > { %1455 = vmatpush3.msra.mxu1 %v960_v33 }
 0x190   : > { %1456 = vmatprep.subr.mxu1 %v1571_v1 }
 0x191   : > { %1457 = vmatpush3.msra.mxu1 %v959_v34 }
 0x192   : > { %1458 = vmatprep.subr.mxu1 %v1571_v1 }
 0x193   : > { %1459 = vmatpush3.msra.mxu1 %v958_v35 }
 0x194   : > { %1460 = vmatprep.subr.mxu1 %v1571_v1 }
 0x195   : > { %1461 = vmatpush3.msra.mxu1 %v957_v36 }
 0x196   : > { %1462 = vmatprep.subr.mxu1 %v1571_v1 }
 0x197   : > { %1463 = vmatpush3.msra.mxu1 %v956_v37 }
 0x198   : > { %1464 = vmatprep.subr.mxu1 %v1571_v1 }
 0x199   : > { %1465 = vmatpush3.msra.mxu1 %v955_v38 }
 0x19a   : > { %1466 = vmatprep.subr.mxu1 %v1571_v1 }
 0x19b   : > { %1467 = vmatpush3.msra.mxu1 %v954_v39 }
 0x19c   : > { %1468 = vmatprep.subr.mxu1 %v1571_v1 }
 0x19d   : > { %1469 = vmatpush3.msra.mxu1 %v953_v40 }
 0x19e   : > { %1470 = vmatprep.subr.mxu1 %v1571_v1 }
 0x19f   : > { %1471 = vmatpush3.msra.mxu1 %v952_v41 }
 0x1a0   : > { %1472 = vmatprep.subr.mxu1 %v1571_v1 }
 0x1a1   : > { %1473 = vmatpush3.msra.mxu1 %v951_v42 }
 0x1a2   : > { %1474 = vmatprep.subr.mxu1 %v1571_v1 }
 0x1a3   : > { %1475 = vmatpush3.msra.mxu1 %v950_v43 }
 0x1a4   : > { %1476 = vmatprep.subr.mxu1 %v1571_v1 }
 0x1a5   : > { %1477 = vmatpush3.msra.mxu1 %v949_v44 }
 0x1a6   : > { %1478 = vmatprep.subr.mxu1 %v1571_v1 }
 0x1a7   : > { %1479 = vmatpush3.msra.mxu1 %v948_v46 }
 0x1a8   : > { %1480 = vmatprep.subr.mxu1 %v1571_v1 }
 0x1a9   : > { %1481 = vmatpush3.msra.mxu1 %v947_v48 }
 0x1aa   : > { %1482 = vmatprep.subr.mxu1 %v1571_v1 }
 0x1ab   : > { %1483 = vmatpush3.msra.mxu1 %v946_v50 }
 0x248   : > { %v867_v52 = vpop.f32.mrf.mxu1 }
 0x24a   : > { %v1444_v53 = vpop.f32.mrf.mxu1 }
 0x24c   : > { %v941_v54 = vpop.f32.mrf.mxu1 }
 0x24d   : > { %v945_v55 = vmax.f32 %v867_v52, %v941_v54 }
 0x24e   : > { %v1451_v56 = vpop.f32.mrf.mxu1 }
 0x24f   : > { %1485 = vmatmul.mubr.f32.vlgmr.msra.gmra.mxu1 %v945_v55  ;;  %1520 = vmatmul.mubr.f32.vlgmr.msra.gmra.mxu0 %v945_v55 }
 0x30f   : > { %v1028_v57 = vpop.f32.mrf.mxu1  ;;  %v1114_v58 = vpop.f32.mrf.mxu0 }
 0x310   : > { %v1118_v59 = vmax.f32 %v1028_v57, %v1114_v58 }
 0x311   : > { %v1486_v60 = vpop.f32.mrf.mxu1  ;;  %v1521_v1 = vpop.f32.mrf.mxu0 }
 0x312   : > { %1120 = vst.msk [vmem:[%s316_s24] sm:$0xff] %vm1119_vm5, %v1118_v59 }
 0x313 PF: > { %s19_s27 = sadd.s32 1, %s1569_s27  }
 0x314   : > { %p16_p4 = scmp.ge.s32.totalorder %s19_s27, 4  }
 0x316   :  { %18 = sbr.rel (!%p16_p4) target bundleno = 1 (0x1), region = 94 }

</bundles_post_ra>
